<compile_context>
chip_gen: v6e
topology: v6e:2x2x1
jax: 0.10.0
libtpu: 0.0.40
codegen_flags: <defaults>
</compile_context>

<pallas_src>
import functools

import jax
import jax.numpy as jnp
from jax.experimental import pallas as pl
from jax.experimental.pallas import tpu as pltpu


def _round_up(x, m):
    return ((x + m - 1) // m) * m


def _pick_tm(B, cap=256):
    """Row-tile: multiple of 16 (bf16 packing), bounded batch-padding waste."""
    b16 = _round_up(max(B, 1), 16)
    if b16 <= cap:
        return b16
    best_tm, best_waste = 16, b16 - B
    for tm in range(cap, 15, -16):
        Bp = _round_up(B, tm)
        waste = Bp - B
        if waste * 8 <= Bp:      # <=12.5% padded rows: take the largest such tile
            return tm
        if waste < best_waste:
            best_tm, best_waste = tm, waste
    return best_tm


# ---------------------------------------------------------------------------
# Kernels
# ---------------------------------------------------------------------------
def _resident_kernel(x_ref, wt_ref, b_ref, o_ref):
    """Weight-resident: whole (K, N) weight + bias stay in VMEM; grid over M only."""
    z = jnp.dot(x_ref[...], wt_ref[...], preferred_element_type=jnp.float32)
    z = z + b_ref[...].astype(jnp.float32)
    # SiLU: z * sigmoid(z) with sigmoid(z) = 0.5*(tanh(z/2)+1)  -> EUP tanh,
    # no VPU divide, numerically stable for large |z|.
    o_ref[...] = (z * (0.5 * (jnp.tanh(0.5 * z) + 1.0))).astype(o_ref.dtype)


def _tiled_kernel(x_ref, wt_ref, b_ref, o_ref):
    """3-D (M, N, K) grid fallback. K must be the innermost ('arbitrary') axis:
    the output block index is constant over k, so o_ref (f32) is resident and we
    accumulate straight into it (no scratch)."""
    k = pl.program_id(2)
    partial = jnp.dot(x_ref[...], wt_ref[...], preferred_element_type=jnp.float32)

    @pl.when(k == 0)
    def _seed():
        # Merge zero-init with the first K step and fold the bias in here.
        o_ref[...] = partial + b_ref[...].astype(jnp.float32)

    @pl.when(k > 0)
    def _accum():
        o_ref[...] += partial

    @pl.when(k == pl.num_programs(2) - 1)
    def _epilogue():
        z = o_ref[...]
        o_ref[...] = z * (0.5 * (jnp.tanh(0.5 * z) + 1.0))


# ---------------------------------------------------------------------------
# Parameter prep (ONE-TIME per model, not per forward call)
# ---------------------------------------------------------------------------
def prepare_params(weight, bias, operand_dtype=jnp.bfloat16):
    """Transpose PyTorch (out,in) weight to (in,out)=[K,N], pad to 128 multiples,
    cast to the MXU feed dtype. Do this once at setup; the forward never touches
    the original weight again (no per-call pad/transpose HBM traffic)."""
    n_out, n_in = weight.shape
    assert n_out == n_in, "DiffusionBlock uses a square Linear(nunits, nunits)"
    assert bias.shape == (n_out,)
    Kp = _round_up(n_in, 128)
    Np = _round_up(n_out, 128)
    wt = weight.T  # (K, N): standard MXU contraction, no per-tile transpose needed
    if (Kp, Np) != (n_in, n_out):
        wt = jnp.zeros((Kp, Np), weight.dtype).at[:n_in, :n_out].set(wt)
    wt = wt.astype(operand_dtype)
    b2d = bias.reshape(1, n_out).astype(jnp.float32)
    if Np != n_out:
        b2d = jnp.zeros((1, Np), jnp.float32).at[:, :n_out].set(b2d)
    return wt, b2d


# Keep the (double-buffered) resident weight comfortably inside the 32 MiB
# default scoped-VMEM budget (safe on v5e/v6e/v7x).
_RESIDENT_WEIGHT_BYTES = 8 * 1024 * 1024


# ---------------------------------------------------------------------------
# Forward
# ---------------------------------------------------------------------------
@functools.partial(jax.jit, static_argnames=("force_tiled", "tile_n", "tile_k"))
def diffusion_block_apply(params, x, *, force_tiled=False, tile_n=None, tile_k=None):
    """y = silu(x @ W^T + b) with pre-prepared params = prepare_params(W, b)."""
    wt, b2d = params
    B, N = x.shape
    Kp, Np = wt.shape
    assert Kp == _round_up(N, 128) and Np == Kp, "params do not match x's feature dim"

    op_dtype = wt.dtype
    isz = jnp.dtype(op_dtype).itemsize
    out_dtype = jnp.float32  # module output is f32; also enables in-place K accumulation

    tm = _pick_tm(B)
    Bp = _round_up(B, tm)

    xp = x.astype(op_dtype)
    if (Bp, Kp) != (B, N):
        xp = jnp.zeros((Bp, Kp), op_dtype).at[:B, :N].set(xp)

    w_bytes = Kp * Np * isz
    resident = (not force_tiled) and (w_bytes <= _RESIDENT_WEIGHT_BYTES)

    if resident:
        # ---- weight-resident fast path: grid over M only -------------------
        needed = 2 * (tm * Kp * isz + w_bytes + tm * Np * 4 + Np * 4)
        out = pl.pallas_call(
            _resident_kernel,
            out_shape=jax.ShapeDtypeStruct((Bp, Np), out_dtype),
            grid=(Bp // tm,),
            in_specs=[
                pl.BlockSpec((tm, Kp), lambda i: (i, 0)),   # x rows
                pl.BlockSpec((Kp, Np), lambda i: (0, 0)),   # whole W^T, VMEM-resident
                pl.BlockSpec((1, Np), lambda i: (0, 0)),    # whole bias
            ],
            out_specs=pl.BlockSpec((tm, Np), lambda i: (i, 0)),
            compiler_params=pltpu.CompilerParams(
                dimension_semantics=("parallel",),
                vmem_limit_bytes=min(max(needed + (8 << 20), 32 << 20), 48 << 20),
            ),
        )(xp, wt, b2d)
    else:
        # ---- tiled 3-D-grid fallback (large N) -----------------------------
        tn = min(tile_n or 512, Np)
        tk = min(tile_k or 2048, Kp)
        while Np % tn:
            tn -= 128
        while Kp % tk:
            tk -= 128
        needed = 2 * (tm * tk * isz + tk * tn * isz + tm * tn * 4 + tn * 4)
        out = pl.pallas_call(
            _tiled_kernel,
            out_shape=jax.ShapeDtypeStruct((Bp, Np), out_dtype),
            grid=(Bp // tm, Np // tn, Kp // tk),           # K innermost (required)
            in_specs=[
                pl.BlockSpec((tm, tk), lambda i, j, k: (i, k)),   # x tile
                pl.BlockSpec((tk, tn), lambda i, j, k: (k, j)),   # W^T tile
                pl.BlockSpec((1, tn), lambda i, j, k: (0, j)),    # bias tile
            ],
            out_specs=pl.BlockSpec((tm, tn), lambda i, j, k: (i, j)),
            compiler_params=pltpu.CompilerParams(
                dimension_semantics=("parallel", "parallel", "arbitrary"),
                vmem_limit_bytes=min(max(needed + (8 << 20), 32 << 20), 48 << 20),
            ),
        )(xp, wt, b2d)

    if (Bp, Np) != (B, N):
        out = out[:B, :N]
    return out


def diffusion_block(x, weight, bias, operand_dtype=jnp.bfloat16):
    """Convenience wrapper (PyTorch (out,in) weight layout). In real use, call
    prepare_params() once and reuse the result across forward calls."""
    return diffusion_block_apply(prepare_params(weight, bias, operand_dtype), x)


if __name__ == "__main__":
    key = jax.random.PRNGKey(0)
    kx, kw, kb = jax.random.split(key, 3)

    def ref_forward(x, w, b):
        z = x @ w.T + b
        return z * jax.nn.sigmoid(z)

    # Case 1: weight-resident fast path (typical DiffusionBlock size), bf16 feeds.
    batch, nunits = 32, 256
    bound = 1.0 / jnp.sqrt(jnp.float32(nunits))
    x = jax.random.normal(kx, (batch, nunits), dtype=jnp.float32)
    weight = jax.random.uniform(kw, (nunits, nunits), jnp.float32, -bound, bound)
    bias = jax.random.uniform(kb, (nunits,), jnp.float32, -bound, bound)

    params = prepare_params(weight, bias)            # one-time: transpose/pad/cast
    out = jax.block_until_ready(diffusion_block_apply(params, x))
    ref = ref_forward(x, weight, bias)
    # Tolerance absorbs bf16 operand feeds / MXU accumulation-order differences.
    assert jnp.allclose(out, ref, atol=2e-2, rtol=2e-2), "mismatch (resident path)"

    # Case 2: ragged shapes -> exercises padding + output slicing.
    b2, n2 = 10, 48
    x2 = jax.random.normal(kx, (b2, n2), dtype=jnp.float32)
    w2 = jax.random.uniform(kw, (n2, n2), jnp.float32, -0.1, 0.1)
    bias2 = jax.random.uniform(kb, (n2,), jnp.float32, -0.1, 0.1)
    out2 = jax.block_until_ready(diffusion_block(x2, w2, bias2))
    assert jnp.allclose(out2, ref_forward(x2, w2, bias2), atol=2e-2, rtol=2e-2), \
        "mismatch (ragged path)"

    # Case 3: force the tiled 3-D-grid fallback (used when W exceeds the VMEM
    # budget) with small tiles so the K-accumulation / bias-seed / epilogue
    # branches are exercised (grid = (2, 2, 2)).
    out3 = jax.block_until_ready(
        diffusion_block_apply(params, x, force_tiled=True, tile_n=128, tile_k=128))
    assert jnp.allclose(out3, ref, atol=2e-2, rtol=2e-2), "mismatch (tiled path)"

    print("KERNEL_OK")
</pallas_src>

<mosaic_0001>
module attributes {stable_mosaic.version = 11 : i64} {
  func.func @_resident_kernel(%arg0: i32, %arg1: memref<32x256xbf16, #tpu.memory_space<vmem>>, %arg2: memref<256x256xbf16, #tpu.memory_space<vmem>>, %arg3: memref<1x256xf32, #tpu.memory_space<vmem>>, %arg4: memref<32x256xf32, #tpu.memory_space<vmem>>) attributes {dimension_semantics = [#tpu.dimension_semantics<parallel>], iteration_bounds = array<i64: 1>, scalar_prefetch = 0 : i64, scratch_operands = 0 : i64, tpu.core_type = #tpu.core_type<tc>, window_params = [{transform_indices = @transform_0, window_bounds = array<i64: 32, 256>}, {pipeline_mode = #tpu.pipeline_mode<synchronous>, transform_indices = @transform_1, window_bounds = array<i64: 256, 256>}, {pipeline_mode = #tpu.pipeline_mode<synchronous>, transform_indices = @transform_2, window_bounds = array<i64: 1, 256>}, {transform_indices = @transform_3, window_bounds = array<i64: 32, 256>}]} {
    %c0 = arith.constant 0 : index
    %c0_0 = arith.constant 0 : index
    %0 = vector.load %arg1[%c0, %c0_0] : memref<32x256xbf16, #tpu.memory_space<vmem>>, vector<32x256xbf16>
    %c0_1 = arith.constant 0 : index
    %c0_2 = arith.constant 0 : index
    %1 = vector.load %arg2[%c0_1, %c0_2] : memref<256x256xbf16, #tpu.memory_space<vmem>>, vector<256x256xbf16>
    %cst = arith.constant dense<0.000000e+00> : vector<32x256xf32>
    %2 = tpu.matmul %0, %1, %cst {dimension_numbers = #tpu.dot_dimension_numbers<[1], [0], [0], [1], [0, 0, 1, 1], [], []>} : vector<32x256xbf16>, vector<256x256xbf16>, vector<32x256xf32> -> vector<32x256xf32>
    %c0_3 = arith.constant 0 : index
    %c0_4 = arith.constant 0 : index
    %3 = vector.load %arg3[%c0_3, %c0_4] : memref<1x256xf32, #tpu.memory_space<vmem>>, vector<1x256xf32>
    %4 = vector.broadcast %3 : vector<1x256xf32> to vector<32x256xf32>
    %5 = arith.addf %2, %4 : vector<32x256xf32>
    %cst_5 = arith.constant 5.000000e-01 : f32
    %6 = vector.broadcast %cst_5 : f32 to vector<32x256xf32>
    %7 = arith.mulf %6, %5 : vector<32x256xf32>
    %8 = math.tanh %7 : vector<32x256xf32>
    %cst_6 = arith.constant 1.000000e+00 : f32
    %9 = vector.broadcast %cst_6 : f32 to vector<32x256xf32>
    %10 = arith.addf %8, %9 : vector<32x256xf32>
    %cst_7 = arith.constant 5.000000e-01 : f32
    %11 = vector.broadcast %cst_7 : f32 to vector<32x256xf32>
    %12 = arith.mulf %11, %10 : vector<32x256xf32>
    %13 = arith.mulf %5, %12 : vector<32x256xf32>
    %c0_8 = arith.constant 0 : index
    %c0_9 = arith.constant 0 : index
    %14 = vector.load %arg4[%c0_8, %c0_9] : memref<32x256xf32, #tpu.memory_space<vmem>>, vector<32x256xf32>
    tpu.vector_store %arg4[%c0_8, %c0_9], %13 {strides = array<i32>} : memref<32x256xf32, #tpu.memory_space<vmem>>, vector<32x256xf32>,
    return
  }
  func.func @transform_0(%arg0: i32) -> (i32, i32) {
    %c0_i32 = arith.constant 0 : i32
    %c0_i32_0 = arith.constant 0 : i32
    return %arg0, %c0_i32 : i32, i32
  }
  func.func @transform_1(%arg0: i32) -> (i32, i32) {
    %c0_i32 = arith.constant 0 : i32
    %c0_i32_0 = arith.constant 0 : i32
    %c0_i32_1 = arith.constant 0 : i32
    return %c0_i32, %c0_i32_0 : i32, i32
  }
  func.func @transform_2(%arg0: i32) -> (i32, i32) {
    %c0_i32 = arith.constant 0 : i32
    %c0_i32_0 = arith.constant 0 : i32
    %c0_i32_1 = arith.constant 0 : i32
    return %c0_i32, %c0_i32_0 : i32, i32
  }
  func.func @transform_3(%arg0: i32) -> (i32, i32) {
    %c0_i32 = arith.constant 0 : i32
    %c0_i32_0 = arith.constant 0 : i32
    return %arg0, %c0_i32 : i32, i32
  }
}

</mosaic_0001>

<bundles_post_ra>
// kernel: diffusion_block_apply.1
= control target key start
LH: loop header
LB: loop body
LE: loop exit
PB: predicated region body
PF: predicated region fallthrough
CT: control target
= control target key end

     0   :  { %8 = vsyncpa [#allocation3], 0  ;;  %s610_s0 = inlined_call_operand.vmem [shape: bf16[32,256], index: 0, kind: input, shape index: {}]   ;;  %s611_s1 = inlined_call_operand.hbm [shape: bf16[256,256], index: 1, kind: input, shape index: {}]   ;;  %s612_s2 = inlined_call_operand.vmem [shape: f32[1,256], index: 2, kind: input, shape index: {}]   ;;  %s613_s3 = inlined_call_operand.hbm [shape: f32[32,256], index: 3, kind: output, shape index: {}]  }
   0x1   :  { %9 = vsyncpa [#allocation4], 0  ;;  %s563_s12 = smov [#allocation2]  }
   0x2   :  { %s17_s13 = sshll.u32 %s563_s12, 4  ;;  %s18_s13 = int_to_ptr.vmem [resolvable:$true] %s17_s13 }
   0x3   :  { %s527_s14 = scalar_lea.vmem %s18_s13, 4096  ;;  %p532_p1 = scmp.lt.s32.totalorder %s18_s13, %s18_s13 }
   0x4   :  { %p528_p0 = scmp.ne.s32.totalorder %s18_s13, %s527_s14  ;;  %p533_p2 = scmp.lt.s32.totalorder %s527_s14, %s527_s14 }
   0x6   :  { %p534_p3 = por %p533_p2, %p532_p1 }
   0x8   :  { %p535_p4 = pnand %p534_p3, %p528_p0 }
   0xa   :  { %538 = shalt.err (!%p535_p4)
}
   0xb   :  { %s564_s15 = smov 128   ;;  %s565_s16 = smov 8  }
   0xc   :  { %23 = dma.hbm_to_vmem [thread:$0]  %s611_s1, 4096, %s18_s13, [#allocation3], %s564_s15, %s564_s15, %s565_s16  }
   0xd   :  { %559 = dma.done.wait [#allocation3], 4096  }
   0xe   :  { %560 = vsyncadd [#allocation3], 4294963200  ;;  %v449_v0 = vld [vmem:[#allocation2 + $0x74] ss:$8 sps:$4 sm:$0xff]   ;;  %v451_v1 = vld [vmem:[#allocation2 + $0x70] ss:$8 sps:$4 sm:$0xff]   ;;  %v67_v36 = vlaneseq }
   0xf   :  { %257 = vmatprep.subr.bf16.mxu0 %v449_v0  ;;  %411 = vmatprep.subr.bf16.mxu1 %v449_v0  ;;  %v452_v2 = vld [vmem:[#allocation2 + $0x64] ss:$8 sps:$4 sm:$0xff]   ;;  %v454_v3 = vld [vmem:[#allocation2 + $0x60] ss:$8 sps:$4 sm:$0xff]   ;;  %v455_v4 = vld [vmem:[#allocation2 + $0x54] ss:$8 sps:$4 sm:$0xff]  }
  0x10   :  { %258 = vmatpush1.bf16.msra.mxu0 %v451_v1  ;;  %427 = vmatpush1.bf16.msra.mxu1 %v451_v1  ;;  %v457_v5 = vld [vmem:[#allocation2 + $0x50] ss:$8 sps:$4 sm:$0xff]   ;;  %v458_v6 = vld [vmem:[#allocation2 + $0x44] ss:$8 sps:$4 sm:$0xff]   ;;  %v460_v7 = vld [vmem:[#allocation2 + $0x40] ss:$8 sps:$4 sm:$0xff]  }
  0x11   :  { %259 = vmatprep.subr.bf16.mxu0 %v452_v2  ;;  %412 = vmatprep.subr.bf16.mxu1 %v452_v2  ;;  %v461_v8 = vld [vmem:[#allocation2 + $0x34] ss:$8 sps:$4 sm:$0xff]   ;;  %v463_v9 = vld [vmem:[#allocation2 + $0x30] ss:$8 sps:$4 sm:$0xff]   ;;  %v464_v10 = vld [vmem:[#allocation2 + $0x24] ss:$8 sps:$4 sm:$0xff]  }
  0x12   :  { %v466_v11 = vld [vmem:[#allocation2 + $0x20] ss:$8 sps:$4 sm:$0xff]   ;;  %v467_v12 = vld [vmem:[#allocation2 + $0x14] ss:$8 sps:$4 sm:$0xff]   ;;  %v499_v13 = vld [vmem:[%s610_s0 + $0x4] ss:$8 sps:$4 sm:$0xff]  }
  0x13   :  { %v469_v14 = vld [vmem:[#allocation2 + $0x10] ss:$8 sps:$4 sm:$0xff]   ;;  %v502_v15 = vld [vmem:[%s610_s0 + $0x14] ss:$8 sps:$4 sm:$0xff]   ;;  %v470_v16 = vld [vmem:[#allocation2 + $0x4] ss:$8 sps:$4 sm:$0xff]   ;;  %289 = vmatprep.mubr.bf16.mxu0 %v499_v13 }
  0x14   :  { %260 = vmatpush1.bf16.msra.mxu0 %v454_v3  ;;  %428 = vmatpush1.bf16.msra.mxu1 %v454_v3  ;;  %v472_v17 = vld [vmem:[#allocation2] ss:$8 sps:$4 sm:$0xff]   ;;  %v473_v18 = vld [vmem:[#allocation2 + $0xf4] ss:$8 sps:$4 sm:$0xff]   ;;  %v475_v19 = vld [vmem:[#allocation2 + $0xf0] ss:$8 sps:$4 sm:$0xff]  }
  0x15   :  { %261 = vmatprep.subr.bf16.mxu0 %v455_v4  ;;  %413 = vmatprep.subr.bf16.mxu1 %v455_v4  ;;  %v476_v20 = vld [vmem:[#allocation2 + $0xe4] ss:$8 sps:$4 sm:$0xff]   ;;  %v478_v21 = vld [vmem:[#allocation2 + $0xe0] ss:$8 sps:$4 sm:$0xff]   ;;  %v479_v22 = vld [vmem:[#allocation2 + $0xd4] ss:$8 sps:$4 sm:$0xff]  }
  0x16   :  { %299 = vmatprep.mubr.bf16.mxu1 %v502_v15  ;;  %v481_v23 = vld [vmem:[#allocation2 + $0xd0] ss:$8 sps:$4 sm:$0xff]   ;;  %v482_v24 = vld [vmem:[#allocation2 + $0xc4] ss:$8 sps:$4 sm:$0xff]   ;;  %v484_v25 = vld [vmem:[#allocation2 + $0xc0] ss:$8 sps:$4 sm:$0xff]  }
  0x17   :  { %v485_v26 = vld [vmem:[#allocation2 + $0xb4] ss:$8 sps:$4 sm:$0xff]   ;;  %v487_v27 = vld [vmem:[#allocation2 + $0xb0] ss:$8 sps:$4 sm:$0xff]   ;;  %v488_v28 = vld [vmem:[#allocation2 + $0xa4] ss:$8 sps:$4 sm:$0xff]  }
  0x18   :  { %262 = vmatpush1.bf16.msra.mxu0 %v457_v5  ;;  %429 = vmatpush1.bf16.msra.mxu1 %v457_v5  ;;  %v490_v29 = vld [vmem:[#allocation2 + $0xa0] ss:$8 sps:$4 sm:$0xff]   ;;  %v491_v30 = vld [vmem:[#allocation2 + $0x94] ss:$8 sps:$4 sm:$0xff]   ;;  %v493_v31 = vld [vmem:[#allocation2 + $0x90] ss:$8 sps:$4 sm:$0xff]  }
  0x19   :  { %263 = vmatprep.subr.bf16.mxu0 %v458_v6  ;;  %414 = vmatprep.subr.bf16.mxu1 %v458_v6  ;;  %v494_v32 = vld [vmem:[#allocation2 + $0x84] ss:$8 sps:$4 sm:$0xff]   ;;  %v496_v33 = vld [vmem:[#allocation2 + $0x80] ss:$8 sps:$4 sm:$0xff]   ;;  %v500_v35 = vld [vmem:[%s610_s0 + $0x10] ss:$8 sps:$4 sm:$0xff]  }
  0x1a   :  { %v497_v34 = vld [vmem:[%s610_s0] ss:$8 sps:$4 sm:$0xff]   ;;  %v68_v37 = vshrl.u32 %v67_v36, 7  ;;  %s566_s0 = smov [#allocation5]  }
  0x1b   :  { %v65_v39 = vld [vmem:[%s612_s2] sm:$0x3]  ;;  %s363_s2 = sshll.u32 %s566_s0, 4  ;;  %s364_s2 = int_to_ptr.vmem [resolvable:$true] %s363_s2 }
  0x1c   :  { %264 = vmatpush1.bf16.msra.mxu0 %v460_v7  ;;  %430 = vmatpush1.bf16.msra.mxu1 %v460_v7  ;;  %v69_v38 = vsub.s32 0, %v68_v37  ;;  %v73_v40 = vsub.s32 1, %v68_v37  ;;  %s539_s28 = scalar_lea.vmem %s364_s2, 1024  ;;  %p544_p6 = scmp.lt.s32.totalorder %s364_s2, %s364_s2 }
  0x1d   :  { %265 = vmatprep.subr.bf16.mxu0 %v461_v8  ;;  %415 = vmatprep.subr.bf16.mxu1 %v461_v8  ;;  %p540_p5 = scmp.ne.s32.totalorder %s364_s2, %s539_s28  ;;  %p545_p7 = scmp.lt.s32.totalorder %s539_s28, %s539_s28 }
  0x1e   :  { %v70_v41 = vrot.slane %v65_v39, %v69_v38  ;;  %v74_v42 = vrot.slane %v65_v39, %v73_v40 }
  0x1f   :  { %p546_p8 = por %p545_p7, %p544_p6 }
  0x20   :  { %266 = vmatpush1.bf16.msra.mxu0 %v463_v9  ;;  %431 = vmatpush1.bf16.msra.mxu1 %v463_v9 }
  0x21   :  { %267 = vmatprep.subr.bf16.mxu0 %v464_v10  ;;  %416 = vmatprep.subr.bf16.mxu1 %v464_v10  ;;  %p547_p9 = pnand %p546_p8, %p540_p5 }
  0x24   :  { %268 = vmatpush1.bf16.msra.mxu0 %v466_v11  ;;  %432 = vmatpush1.bf16.msra.mxu1 %v466_v11 }
  0x25   :  { %269 = vmatprep.subr.bf16.mxu0 %v467_v12  ;;  %417 = vmatprep.subr.bf16.mxu1 %v467_v12 }
  0x28   :  { %270 = vmatpush1.bf16.msra.mxu0 %v469_v14  ;;  %433 = vmatpush1.bf16.msra.mxu1 %v469_v14 }
  0x29   :  { %271 = vmatprep.subr.bf16.mxu0 %v470_v16  ;;  %418 = vmatprep.subr.bf16.mxu1 %v470_v16 }
  0x2c   :  { %272 = vmatpush1.bf16.msra.mxu0 %v472_v17  ;;  %434 = vmatpush1.bf16.msra.mxu1 %v472_v17 }
  0x2d   :  { %273 = vmatprep.subr.bf16.mxu0 %v473_v18  ;;  %419 = vmatprep.subr.bf16.mxu1 %v473_v18 }
  0x30   :  { %274 = vmatpush2.bf16.msra.mxu0 %v475_v19  ;;  %435 = vmatpush2.bf16.msra.mxu1 %v475_v19 }
  0x31   :  { %275 = vmatprep.subr.bf16.mxu0 %v476_v20  ;;  %420 = vmatprep.subr.bf16.mxu1 %v476_v20 }
  0x34   :  { %276 = vmatpush2.bf16.msra.mxu0 %v478_v21  ;;  %436 = vmatpush2.bf16.msra.mxu1 %v478_v21 }
  0x35   :  { %277 = vmatprep.subr.bf16.mxu0 %v479_v22  ;;  %421 = vmatprep.subr.bf16.mxu1 %v479_v22 }
  0x38   :  { %278 = vmatpush2.bf16.msra.mxu0 %v481_v23  ;;  %437 = vmatpush2.bf16.msra.mxu1 %v481_v23 }
  0x39   :  { %279 = vmatprep.subr.bf16.mxu0 %v482_v24  ;;  %422 = vmatprep.subr.bf16.mxu1 %v482_v24 }
  0x3c   :  { %280 = vmatpush2.bf16.msra.mxu0 %v484_v25  ;;  %438 = vmatpush2.bf16.msra.mxu1 %v484_v25 }
  0x3d   :  { %281 = vmatprep.subr.bf16.mxu0 %v485_v26  ;;  %423 = vmatprep.subr.bf16.mxu1 %v485_v26 }
  0x40   :  { %282 = vmatpush2.bf16.msra.mxu0 %v487_v27  ;;  %439 = vmatpush2.bf16.msra.mxu1 %v487_v27 }
  0x41   :  { %283 = vmatprep.subr.bf16.mxu0 %v488_v28  ;;  %424 = vmatprep.subr.bf16.mxu1 %v488_v28 }
  0x44   :  { %284 = vmatpush2.bf16.msra.mxu0 %v490_v29  ;;  %440 = vmatpush2.bf16.msra.mxu1 %v490_v29 }
  0x45   :  { %285 = vmatprep.subr.bf16.mxu0 %v491_v30  ;;  %425 = vmatprep.subr.bf16.mxu1 %v491_v30 }
  0x48   :  { %286 = vmatpush2.bf16.msra.mxu0 %v493_v31  ;;  %441 = vmatpush2.bf16.msra.mxu1 %v493_v31 }
  0x49   :  { %287 = vmatprep.subr.bf16.mxu0 %v494_v32  ;;  %426 = vmatprep.subr.bf16.mxu1 %v494_v32 }
  0x4c   :  { %288 = vmatpush2.bf16.msra.mxu0 %v496_v33  ;;  %442 = vmatpush2.bf16.msra.mxu1 %v496_v33 }
  0x4f   :  { %290 = vmatmul.mubr.bf16.vlgmr.msra.gmra.mxu0 %v497_v34  ;;  %300 = vmatmul.mubr.bf16.vlgmr.msra.gmra.mxu1 %v500_v35 }
 0x10f   :  { %v291_v43 = vpop.f32.mrf.mxu0  ;;  %v301_v44 = vpop.f32.mrf.mxu1 }
 0x110   :  { %v292_v45 = vadd.f32 %v291_v43, %v70_v41  ;;  %v302_v46 = vadd.f32 %v301_v44, %v70_v41 }
 0x111   :  { %v293_v47 = vpop.f32.mrf.mxu0  ;;  %v303_v48 = vpop.f32.mrf.mxu1 }
 0x112   :  { %v310_v49 = vmul.f32 0.5, %v292_v45  ;;  %v314_v50 = vmul.f32 0.5, %v302_v46  ;;  %v294_v51 = vadd.f32 %v293_v47, %v74_v42  ;;  %v304_v52 = vadd.f32 %v303_v48, %v74_v42 }
 0x113   :  { %v295_v53 = vpop.f32.mrf.mxu0  ;;  %v305_v54 = vpop.f32.mrf.mxu1 }
 0x114   :  { %503 = vtanh.f32 %v310_v49  ;;  %v311_v55 = vmul.f32 0.5, %v294_v51  ;;  %v315_v56 = vmul.f32 0.5, %v304_v52  ;;  %v296_v57 = vadd.f32 %v295_v53, %v70_v41 }
 0x115   :  { %505 = vtanh.f32 %v314_v50  ;;  %v306_v58 = vadd.f32 %v305_v54, %v70_v41  ;;  %v297_v59 = vpop.f32.mrf.mxu0  ;;  %v307_v60 = vpop.f32.mrf.mxu1 }
 0x116   :  { %507 = vtanh.f32 %v311_v55  ;;  %v312_v61 = vmul.f32 0.5, %v296_v57  ;;  %v298_v62 = vadd.f32 %v297_v59, %v74_v42  ;;  %v308_v63 = vadd.f32 %v307_v60, %v74_v42 }
 0x117   :  { %509 = vtanh.f32 %v315_v56  ;;  %v316_v0 = vmul.f32 0.5, %v306_v58 }
 0x118   :  { %511 = vtanh.f32 %v312_v61  ;;  %v313_v1 = vmul.f32 0.5, %v298_v62  ;;  %v317_v2 = vmul.f32 0.5, %v308_v63 }
 0x119   :  { %513 = vtanh.f32 %v316_v0 }
 0x11a   :  { %515 = vtanh.f32 %v313_v1 }
 0x11b   :  { %517 = vtanh.f32 %v317_v2 }
 0x121   :  { %v504_v3 = vpop.eup %503 }
 0x122   :  { %v506_v4 = vpop.eup %505  ;;  %v326_v5 = vadd.f32 1.0, %v504_v3 }
 0x123   :  { %v508_v6 = vpop.eup %507  ;;  %v330_v7 = vadd.f32 1.0, %v506_v4 }
 0x124   :  { %v510_v8 = vpop.eup %509  ;;  %v334_v9 = vmul.f32 0.5, %v326_v5  ;;  %v327_v10 = vadd.f32 1.0, %v508_v6 }
 0x125   :  { %v512_v11 = vpop.eup %511  ;;  %v338_v12 = vmul.f32 0.5, %v330_v7  ;;  %v331_v13 = vadd.f32 1.0, %v510_v8 }
 0x126   :  { %v514_v14 = vpop.eup %513  ;;  %v342_v15 = vmul.f32 %v334_v9, %v292_v45  ;;  %v335_v16 = vmul.f32 0.5, %v327_v10  ;;  %v328_v17 = vadd.f32 1.0, %v512_v11 }
 0x127   :  { %v516_v18 = vpop.eup %515  ;;  %v346_v19 = vmul.f32 %v338_v12, %v302_v46  ;;  %v339_v20 = vmul.f32 0.5, %v331_v13  ;;  %v332_v21 = vadd.f32 1.0, %v514_v14 }
 0x128   :  { %v518_v22 = vpop.eup %517  ;;  %350 = vst [vmem:[#allocation5] sm:$0xff] %v342_v15  ;;  %v343_v23 = vmul.f32 %v335_v16, %v294_v51  ;;  %v336_v24 = vmul.f32 0.5, %v328_v17  ;;  %v329_v25 = vadd.f32 1.0, %v516_v18 }
 0x129   :  { %354 = vst [vmem:[#allocation5 + $0x20] sm:$0xff] %v346_v19  ;;  %v347_v26 = vmul.f32 %v339_v20, %v304_v52  ;;  %v340_v27 = vmul.f32 0.5, %v332_v21  ;;  %v333_v28 = vadd.f32 1.0, %v518_v22 }
 0x12a   :  { %351 = vst [vmem:[#allocation5 + $0x8] sm:$0xff] %v343_v23  ;;  %v344_v29 = vmul.f32 %v336_v24, %v296_v57  ;;  %v337_v30 = vmul.f32 0.5, %v329_v25 }
 0x12b   :  { %355 = vst [vmem:[#allocation5 + $0x28] sm:$0xff] %v347_v26  ;;  %v348_v31 = vmul.f32 %v340_v27, %v306_v58  ;;  %v341_v32 = vmul.f32 0.5, %v333_v28 }
 0x12c   :  { %352 = vst [vmem:[#allocation5 + $0x10] sm:$0xff] %v344_v29  ;;  %v345_v33 = vmul.f32 %v337_v30, %v298_v62 }
 0x12d   :  { %356 = vst [vmem:[#allocation5 + $0x30] sm:$0xff] %v348_v31  ;;  %v349_v34 = vmul.f32 %v341_v32, %v308_v63 }
 0x12e   :  { %353 = vst [vmem:[#allocation5 + $0x18] sm:$0xff] %v345_v33 }
 0x12f   :  { %357 = vst [vmem:[#allocation5 + $0x38] sm:$0xff] %v349_v34 }
 0x130   :  { %550 = shalt.err (!%p547_p9)
}
 0x131   :  { %s567_s29 = smov 256   ;;  %s568_s30 = smov 16  }
 0x132   :  { %369 = dma.vmem_to_hbm [thread:$0]  %s364_s2, 1024, %s613_s3, [#allocation4], %s567_s29, %s567_s29, %s568_s30  }
 0x133   :  { %561 = dma.done.wait [#allocation4], 1024  }
 0x134   :  { %562 = vsyncadd [#allocation4], 4294966272 }
 0x135   :  { %373 = vsyncpa [#allocation3], 1 }
 0x136   :  { %374 = vsyncpa [#allocation4], 1 }

</bundles_post_ra>
